<compile_context>
chip_gen: v7x
topology: tpu7x:2x2x1
jax: 0.10.0
libtpu: 0.0.40
codegen_flags: <defaults>
</compile_context>

<pallas_src>
import functools

import jax
import jax.numpy as jnp
from jax import lax
from jax.experimental import pallas as pl
from jax.experimental.pallas import tpu as pltpu


def _round_up(x, m):
    return ((x + m - 1) // m) * m


def _sr_loss_kernel(y_out_ref, y_true_ref, means_ref, vars_ref, w_ref, out_ref,
                    s1_acc, vnum_acc, mpix_acc, *, from_logits: bool):
    k = pl.program_id(1)

    @pl.when(k == 0)
    def _init():
        s1_acc[...] = jnp.zeros_like(s1_acc)
        vnum_acc[...] = jnp.zeros_like(vnum_acc)
        mpix_acc[...] = jnp.zeros_like(mpix_acc)

    # Upcast bf16 inputs to f32 for the elementwise math (v5e VPU has no bf16).
    yo = y_out_ref[0].astype(jnp.float32)     # (C, T) logits tile
    yt = y_true_ref[0].astype(jnp.float32)    # (N, T) NLCD mask tile

    if from_logits:
        # Softmax over the channel axis (torch Softmax(dim=1)); per-pixel, so
        # it tiles cleanly over P.
        m = jnp.max(yo, axis=0, keepdims=True)
        e = jnp.exp(yo - m)
        inv = pl.reciprocal(jnp.sum(e, axis=0, keepdims=True), approx=True)
        y_pred = e * inv                                            # (C, T)
    else:
        y_pred = yo

    # Spatial sums per (nlcd_class, pred_class) pair expressed as matmuls
    # over the pixel axis:
    #   S1[n, c] = sum_p y_true[n, p]   * y_pred[c, p]
    #   S2[n, c] = sum_p y_true[n, p]^2 * y_pred[c, p]^2
    # so that sum(masked * (1 - masked)) = S1 - S2.
    dn = (((1,), (1,)), ((), ()))
    s1 = lax.dot_general(yt, y_pred, dn,
                         preferred_element_type=jnp.float32)        # (N, C)
    s2 = lax.dot_general(yt * yt, y_pred * y_pred, dn,
                         preferred_element_type=jnp.float32)        # (N, C)

    s1_acc[...] += s1
    vnum_acc[...] += s1 - s2                   # cancellation-free per tile
    mpix_acc[...] += jnp.sum(yt, axis=1, keepdims=True)             # (N, 1)

    @pl.when(k == pl.num_programs(1) - 1)
    def _epilogue():
        mask_pix = mpix_acc[...]                                     # (N, 1)
        mask_size = jnp.sum(mask_pix, axis=0, keepdims=True) + 10.0  # (1, 1)
        c_mask_size = mask_pix + 1e-6                                # (N, 1)

        mean = s1_acc[...] / c_mask_size                             # (N, C)
        var = vnum_acc[...] / (c_mask_size * c_mask_size)            # (N, C)

        center = means_ref[...]                                      # (N, C)
        radius = vars_ref[...]                                       # (N, C)

        dd = jnp.maximum(jnp.abs(mean - center) - radius, 0.0)       # ddist
        c_loss = dd * dd / (var + radius * radius + 1e-6) + jnp.log(var + 0.03)
        c_loss = c_loss * (c_mask_size / mask_size) * w_ref[...]     # (N, C)

        # sum over nlcd classes (loop accumulation) and pred channels (dim=1)
        tot = jnp.sum(jnp.sum(c_loss, axis=1, keepdims=True),
                      axis=0, keepdims=True)                         # (1, 1)
        out_ref[0] = jnp.broadcast_to(
            tot, (1, out_ref.shape[2])).astype(out_ref.dtype)


def sr_loss(y_out, y_true, nlcd_class_weights, nlcd_means, nlcd_vars,
            reduction=True, from_logits=True,
            tile_p=32768, input_dtype=jnp.bfloat16):
    """Pallas implementation of SRLoss.forward.

    y_out:  (B, C, H, W) logits
    y_true: (B, N, H, W) NLCD masks
    nlcd_class_weights: (N,), nlcd_means/nlcd_vars: (N, C)
    tile_p: pixel tile size (lanes). 32768 keeps the double-buffered bf16
            input blocks + f32 temporaries well under the scoped-VMEM budget
            on v5e/v6e/v7x while amortising per-step pipeline overhead.
    input_dtype: dtype used to ship y_out/y_true to the kernel (bf16 halves
            HBM traffic; the kernel upcasts to f32 internally).
    """
    B, C, H, W = y_out.shape
    N = nlcd_class_weights.shape[0]
    P = H * W

    tile_p = max(128, _round_up(min(tile_p, _round_up(P, 128)), 128))
    P_pad = _round_up(P, tile_p)
    num_p_tiles = P_pad // tile_p

    yo = jnp.asarray(y_out, input_dtype).reshape(B, C, P)
    yt = jnp.asarray(y_true, input_dtype).reshape(B, N, P)
    if P_pad != P:
        # zero-padded pixels contribute nothing: the mask is 0 there.
        yo = jnp.pad(yo, ((0, 0), (0, 0), (0, P_pad - P)))
        yt = jnp.pad(yt, ((0, 0), (0, 0), (0, P_pad - P)))

    means = jnp.asarray(nlcd_means, jnp.float32).reshape(N, C)
    vars_ = jnp.asarray(nlcd_vars, jnp.float32).reshape(N, C)
    w = jnp.asarray(nlcd_class_weights, jnp.float32).reshape(N, 1)

    kernel = functools.partial(_sr_loss_kernel, from_logits=from_logits)

    out = pl.pallas_call(
        kernel,
        out_shape=jax.ShapeDtypeStruct((B, 1, 128), jnp.float32),
        grid=(B, num_p_tiles),
        in_specs=[
            pl.BlockSpec((1, C, tile_p), lambda b, k: (b, 0, k)),
            pl.BlockSpec((1, N, tile_p), lambda b, k: (b, 0, k)),
            pl.BlockSpec((N, C), lambda b, k: (0, 0)),
            pl.BlockSpec((N, C), lambda b, k: (0, 0)),
            pl.BlockSpec((N, 1), lambda b, k: (0, 0)),
        ],
        out_specs=pl.BlockSpec((1, 1, 128), lambda b, k: (b, 0, 0)),
        scratch_shapes=[
            pltpu.VMEM((N, C), jnp.float32),   # S1 accumulator
            pltpu.VMEM((N, C), jnp.float32),   # S1 - S2 (variance numerator)
            pltpu.VMEM((N, 1), jnp.float32),   # per-nlcd-class mask pixel count
        ],
        compiler_params=pltpu.CompilerParams(
            dimension_semantics=("parallel", "arbitrary"),
            vmem_limit_bytes=48 * 1024 * 1024),
    )(yo, yt, means, vars_, w)

    per_batch = out[:, 0, 0]           # == torch.sum(loss, dim=1), shape (B,)
    if reduction:
        return jnp.mean(per_batch)
    return per_batch


def sr_loss_ref(y_out, y_true, nlcd_class_weights, nlcd_means, nlcd_vars,
                reduction=True):
    """Pure-JAX reference matching the PyTorch forward exactly."""
    y_pred = jax.nn.softmax(y_out, axis=1)
    mask_size = jnp.sum(y_true, axis=(1, 2, 3))[:, None] + 10.0
    loss = 0.0
    for n in range(nlcd_class_weights.shape[0]):
        c_mask = y_true[:, n:n + 1, :, :]
        c_mask_size = jnp.sum(c_mask, axis=(2, 3)) + 1e-06
        masked = y_pred * c_mask
        mean = jnp.sum(masked, axis=(2, 3)) / c_mask_size
        var = jnp.sum(masked * (1.0 - masked), axis=(2, 3)) / (c_mask_size ** 2)
        dd = jnp.maximum(jnp.abs(mean - nlcd_means[n]) - nlcd_vars[n], 0.0)
        c_loss = dd ** 2 / (var + nlcd_vars[n] ** 2 + 1e-06) + jnp.log(var + 0.03)
        c_loss = c_loss * (c_mask_size / mask_size) * nlcd_class_weights[n]
        loss = loss + c_loss
    s = jnp.sum(loss, axis=1)
    return jnp.mean(s) if reduction else s


if __name__ == "__main__":
    key = jax.random.PRNGKey(0)
    k1, k2, k3, k4, k5 = jax.random.split(key, 5)

    B, C, N, H, W = 2, 4, 5, 16, 16   # batch, pred classes, nlcd classes, spatial

    y_out = jax.random.normal(k1, (B, C, H, W), jnp.float32)
    y_true = jax.random.uniform(k2, (B, N, H, W), jnp.float32)

    # deterministic synthetic "module parameters"
    nlcd_means = jax.random.uniform(k3, (N, C), jnp.float32)
    nlcd_vars = jax.random.uniform(k4, (N, C), jnp.float32,
                                   minval=0.05, maxval=0.2)
    nlcd_class_weights = jax.random.uniform(k5, (N,), jnp.float32,
                                            minval=0.5, maxval=1.5)

    # --- Check 1: f32 inputs, small pixel tile to exercise the multi-tile
    # accumulation path (P = 256 -> 2 pixel tiles). ---
    out_f32 = sr_loss(y_out, y_true, nlcd_class_weights, nlcd_means, nlcd_vars,
                      reduction=True, from_logits=True,
                      tile_p=128, input_dtype=jnp.float32)
    out_f32 = jax.block_until_ready(out_f32)
    ref_f32 = sr_loss_ref(y_out, y_true, nlcd_class_weights, nlcd_means,
                          nlcd_vars, reduction=True)
    assert jnp.allclose(out_f32, ref_f32, rtol=5e-3, atol=1e-3), (out_f32, ref_f32)

    # --- Check 2: default (bf16 inputs, default tile). Reference is computed
    # on the same bf16-rounded inputs so the comparison isolates kernel math. ---
    out_bf16 = sr_loss(y_out, y_true, nlcd_class_weights, nlcd_means, nlcd_vars,
                       reduction=True, from_logits=True)
    out_bf16 = jax.block_until_ready(out_bf16)
    y_out_r = y_out.astype(jnp.bfloat16).astype(jnp.float32)
    y_true_r = y_true.astype(jnp.bfloat16).astype(jnp.float32)
    ref_bf16 = sr_loss_ref(y_out_r, y_true_r, nlcd_class_weights, nlcd_means,
                           nlcd_vars, reduction=True)
    assert jnp.allclose(out_bf16, ref_bf16, rtol=5e-3, atol=1e-3), (out_bf16, ref_bf16)

    print("KERNEL_OK")
</pallas_src>

<mosaic_0001>
module attributes {stable_mosaic.version = 11 : i64} {
  func.func @_sr_loss_kernel(%arg0: i32, %arg1: i32, %arg2: memref<1x4x128xf32, #tpu.memory_space<vmem>>, %arg3: memref<1x5x128xf32, #tpu.memory_space<vmem>>, %arg4: memref<5x4xf32, #tpu.memory_space<vmem>>, %arg5: memref<5x4xf32, #tpu.memory_space<vmem>>, %arg6: memref<5x1xf32, #tpu.memory_space<vmem>>, %arg7: memref<1x1x128xf32, #tpu.memory_space<vmem>>, %arg8: memref<5x4xf32, #tpu.memory_space<vmem>>, %arg9: memref<5x4xf32, #tpu.memory_space<vmem>>, %arg10: memref<5x1xf32, #tpu.memory_space<vmem>>) attributes {dimension_semantics = [#tpu.dimension_semantics<parallel>, #tpu.dimension_semantics<arbitrary>], iteration_bounds = array<i64: 2, 2>, scalar_prefetch = 0 : i64, scratch_operands = 3 : i64, tpu.core_type = #tpu.core_type<tc>, window_params = [{transform_indices = @transform_0, window_bounds = array<i64: 1, 4, 128>}, {transform_indices = @transform_1, window_bounds = array<i64: 1, 5, 128>}, {pipeline_mode = #tpu.pipeline_mode<synchronous>, transform_indices = @transform_2, window_bounds = array<i64: 5, 4>}, {pipeline_mode = #tpu.pipeline_mode<synchronous>, transform_indices = @transform_3, window_bounds = array<i64: 5, 4>}, {pipeline_mode = #tpu.pipeline_mode<synchronous>, transform_indices = @transform_4, window_bounds = array<i64: 5, 1>}, {transform_indices = @transform_5, window_bounds = array<i64: 1, 1, 128>}]} {
    %c0_i32 = arith.constant 0 : i32
    %0 = arith.cmpi eq, %arg1, %c0_i32 : i32
    %1 = arith.extui %0 : i1 to i32
    %c0_i32_0 = arith.constant 0 : i32
    %2 = arith.cmpi ne, %1, %c0_i32_0 : i32
    scf.if %2 {
      %cst_23 = arith.constant 0.000000e+00 : f32
      %36 = vector.broadcast %cst_23 : f32 to vector<5x4xf32>
      %c0_24 = arith.constant 0 : index
      %c0_25 = arith.constant 0 : index
      %37 = vector.load %arg8[%c0_24, %c0_25] : memref<5x4xf32, #tpu.memory_space<vmem>>, vector<5x4xf32>
      tpu.vector_store %arg8[%c0_24, %c0_25], %36 {strides = array<i32>} : memref<5x4xf32, #tpu.memory_space<vmem>>, vector<5x4xf32>,
      %cst_26 = arith.constant 0.000000e+00 : f32
      %38 = vector.broadcast %cst_26 : f32 to vector<5x4xf32>
      %c0_27 = arith.constant 0 : index
      %c0_28 = arith.constant 0 : index
      %39 = vector.load %arg9[%c0_27, %c0_28] : memref<5x4xf32, #tpu.memory_space<vmem>>, vector<5x4xf32>
      tpu.vector_store %arg9[%c0_27, %c0_28], %38 {strides = array<i32>} : memref<5x4xf32, #tpu.memory_space<vmem>>, vector<5x4xf32>,
      %cst_29 = arith.constant 0.000000e+00 : f32
      %40 = vector.broadcast %cst_29 : f32 to vector<5x1xf32>
      %c0_30 = arith.constant 0 : index
      %c0_31 = arith.constant 0 : index
      %41 = vector.load %arg10[%c0_30, %c0_31] : memref<5x1xf32, #tpu.memory_space<vmem>>, vector<5x1xf32>
      tpu.vector_store %arg10[%c0_30, %c0_31], %40 {strides = array<i32>} : memref<5x1xf32, #tpu.memory_space<vmem>>, vector<5x1xf32>,
    } else {
    }
    %c0 = arith.constant 0 : index
    %c0_1 = arith.constant 0 : index
    %c0_2 = arith.constant 0 : index
    %3 = vector.load %arg2[%c0, %c0_1, %c0_2] : memref<1x4x128xf32, #tpu.memory_space<vmem>>, vector<1x4x128xf32>
    %4 = vector.shape_cast %3 : vector<1x4x128xf32> to vector<4x128xf32>
    %c0_3 = arith.constant 0 : index
    %c0_4 = arith.constant 0 : index
    %c0_5 = arith.constant 0 : index
    %5 = vector.load %arg3[%c0_3, %c0_4, %c0_5] : memref<1x5x128xf32, #tpu.memory_space<vmem>>, vector<1x5x128xf32>
    %6 = vector.shape_cast %5 : vector<1x5x128xf32> to vector<5x128xf32>
    %cst = arith.constant dense<0xFF800000> : vector<128xf32>
    %7 = vector.multi_reduction <maximumf>, %4, %cst [0] : vector<4x128xf32> to vector<128xf32>
    %8 = vector.shape_cast %7 : vector<128xf32> to vector<1x128xf32>
    %9 = vector.broadcast %8 : vector<1x128xf32> to vector<4x128xf32>
    %10 = arith.subf %4, %9 : vector<4x128xf32>
    %11 = math.exp %10 : vector<4x128xf32>
    %cst_6 = arith.constant dense<0.000000e+00> : vector<128xf32>
    %12 = vector.multi_reduction <add>, %11, %cst_6 [0] : vector<4x128xf32> to vector<128xf32>
    %13 = vector.shape_cast %12 : vector<128xf32> to vector<1x128xf32>
    %14 = tpu.reciprocal %13 {approx = true} : vector<1x128xf32> -> vector<1x128xf32>
    %15 = vector.broadcast %14 : vector<1x128xf32> to vector<4x128xf32>
    %16 = arith.mulf %11, %15 : vector<4x128xf32>
    %cst_7 = arith.constant dense<0.000000e+00> : vector<5x4xf32>
    %17 = tpu.matmul %6, %16, %cst_7 {dimension_numbers = #tpu.dot_dimension_numbers<[1], [1], [0], [0], [0, 0, 1, 0], [], []>} : vector<5x128xf32>, vector<4x128xf32>, vector<5x4xf32> -> vector<5x4xf32>
    %18 = arith.mulf %6, %6 : vector<5x128xf32>
    %19 = arith.mulf %16, %16 : vector<4x128xf32>
    %cst_8 = arith.constant dense<0.000000e+00> : vector<5x4xf32>
    %20 = tpu.matmul %18, %19, %cst_8 {dimension_numbers = #tpu.dot_dimension_numbers<[1], [1], [0], [0], [0, 0, 1, 0], [], []>} : vector<5x128xf32>, vector<4x128xf32>, vector<5x4xf32> -> vector<5x4xf32>
    %c0_9 = arith.constant 0 : index
    %c0_10 = arith.constant 0 : index
    %21 = vector.load %arg8[%c0_9, %c0_10] : memref<5x4xf32, #tpu.memory_space<vmem>>, vector<5x4xf32>
    %22 = arith.addf %21, %17 : vector<5x4xf32>
    %c0_11 = arith.constant 0 : index
    %c0_12 = arith.constant 0 : index
    %23 = vector.load %arg8[%c0_11, %c0_12] : memref<5x4xf32, #tpu.memory_space<vmem>>, vector<5x4xf32>
    tpu.vector_store %arg8[%c0_11, %c0_12], %22 {strides = array<i32>} : memref<5x4xf32, #tpu.memory_space<vmem>>, vector<5x4xf32>,
    %c0_13 = arith.constant 0 : index
    %c0_14 = arith.constant 0 : index
    %24 = vector.load %arg9[%c0_13, %c0_14] : memref<5x4xf32, #tpu.memory_space<vmem>>, vector<5x4xf32>
    %25 = arith.subf %17, %20 : vector<5x4xf32>
    %26 = arith.addf %24, %25 : vector<5x4xf32>
    %c0_15 = arith.constant 0 : index
    %c0_16 = arith.constant 0 : index
    %27 = vector.load %arg9[%c0_15, %c0_16] : memref<5x4xf32, #tpu.memory_space<vmem>>, vector<5x4xf32>
    tpu.vector_store %arg9[%c0_15, %c0_16], %26 {strides = array<i32>} : memref<5x4xf32, #tpu.memory_space<vmem>>, vector<5x4xf32>,
    %c0_17 = arith.constant 0 : index
    %c0_18 = arith.constant 0 : index
    %28 = vector.load %arg10[%c0_17, %c0_18] : memref<5x1xf32, #tpu.memory_space<vmem>>, vector<5x1xf32>
    %cst_19 = arith.constant dense<0.000000e+00> : vector<5xf32>
    %29 = vector.multi_reduction <add>, %6, %cst_19 [1] : vector<5x128xf32> to vector<5xf32>
    %30 = vector.shape_cast %29 : vector<5xf32> to vector<5x1xf32>
    %31 = arith.addf %28, %30 : vector<5x1xf32>
    %c0_20 = arith.constant 0 : index
    %c0_21 = arith.constant 0 : index
    %32 = vector.load %arg10[%c0_20, %c0_21] : memref<5x1xf32, #tpu.memory_space<vmem>>, vector<5x1xf32>
    tpu.vector_store %arg10[%c0_20, %c0_21], %31 {strides = array<i32>} : memref<5x1xf32, #tpu.memory_space<vmem>>, vector<5x1xf32>,
    %c1_i32 = arith.constant 1 : i32
    %33 = arith.cmpi eq, %arg1, %c1_i32 : i32
    %34 = arith.extui %33 : i1 to i32
    %c0_i32_22 = arith.constant 0 : i32
    %35 = arith.cmpi ne, %34, %c0_i32_22 : i32
    scf.if %35 {
      %c0_23 = arith.constant 0 : index
      %c0_24 = arith.constant 0 : index
      %36 = vector.load %arg10[%c0_23, %c0_24] : memref<5x1xf32, #tpu.memory_space<vmem>>, vector<5x1xf32>
      %cst_25 = arith.constant dense<0.000000e+00> : vector<1xf32>
      %37 = vector.multi_reduction <add>, %36, %cst_25 [0] : vector<5x1xf32> to vector<1xf32>
      %38 = vector.shape_cast %37 : vector<1xf32> to vector<1x1xf32>
      %cst_26 = arith.constant 1.000000e+01 : f32
      %39 = vector.broadcast %cst_26 : f32 to vector<1x1xf32>
      %40 = arith.addf %38, %39 : vector<1x1xf32>
      %cst_27 = arith.constant 9.99999997E-7 : f32
      %41 = vector.broadcast %cst_27 : f32 to vector<5x1xf32>
      %42 = arith.addf %36, %41 : vector<5x1xf32>
      %c0_28 = arith.constant 0 : index
      %c0_29 = arith.constant 0 : index
      %43 = vector.load %arg8[%c0_28, %c0_29] : memref<5x4xf32, #tpu.memory_space<vmem>>, vector<5x4xf32>
      %44 = vector.broadcast %42 : vector<5x1xf32> to vector<5x4xf32>
      %45 = arith.divf %43, %44 : vector<5x4xf32>
      %c0_30 = arith.constant 0 : index
      %c0_31 = arith.constant 0 : index
      %46 = vector.load %arg9[%c0_30, %c0_31] : memref<5x4xf32, #tpu.memory_space<vmem>>, vector<5x4xf32>
      %47 = arith.mulf %42, %42 : vector<5x1xf32>
      %48 = vector.broadcast %47 : vector<5x1xf32> to vector<5x4xf32>
      %49 = arith.divf %46, %48 : vector<5x4xf32>
      %c0_32 = arith.constant 0 : index
      %c0_33 = arith.constant 0 : index
      %50 = vector.load %arg4[%c0_32, %c0_33] : memref<5x4xf32, #tpu.memory_space<vmem>>, vector<5x4xf32>
      %c0_34 = arith.constant 0 : index
      %c0_35 = arith.constant 0 : index
      %51 = vector.load %arg5[%c0_34, %c0_35] : memref<5x4xf32, #tpu.memory_space<vmem>>, vector<5x4xf32>
      %52 = arith.subf %45, %50 : vector<5x4xf32>
      %53 = math.absf %52 : vector<5x4xf32>
      %54 = arith.subf %53, %51 : vector<5x4xf32>
      %cst_36 = arith.constant 0.000000e+00 : f32
      %55 = vector.broadcast %cst_36 : f32 to vector<5x4xf32>
      %56 = arith.maximumf %54, %55 : vector<5x4xf32>
      %57 = arith.mulf %56, %56 : vector<5x4xf32>
      %58 = arith.mulf %51, %51 : vector<5x4xf32>
      %59 = arith.addf %49, %58 : vector<5x4xf32>
      %cst_37 = arith.constant 9.99999997E-7 : f32
      %60 = vector.broadcast %cst_37 : f32 to vector<5x4xf32>
      %61 = arith.addf %59, %60 : vector<5x4xf32>
      %62 = arith.divf %57, %61 : vector<5x4xf32>
      %cst_38 = arith.constant 3.000000e-02 : f32
      %63 = vector.broadcast %cst_38 : f32 to vector<5x4xf32>
      %64 = arith.addf %49, %63 : vector<5x4xf32>
      %65 = math.log %64 : vector<5x4xf32>
      %66 = arith.addf %62, %65 : vector<5x4xf32>
      %67 = vector.broadcast %40 : vector<1x1xf32> to vector<5x1xf32>
      %68 = arith.divf %42, %67 : vector<5x1xf32>
      %69 = vector.broadcast %68 : vector<5x1xf32> to vector<5x4xf32>
      %70 = arith.mulf %66, %69 : vector<5x4xf32>
      %c0_39 = arith.constant 0 : index
      %c0_40 = arith.constant 0 : index
      %71 = vector.load %arg6[%c0_39, %c0_40] : memref<5x1xf32, #tpu.memory_space<vmem>>, vector<5x1xf32>
      %72 = vector.broadcast %71 : vector<5x1xf32> to vector<5x4xf32>
      %73 = arith.mulf %70, %72 : vector<5x4xf32>
      %cst_41 = arith.constant dense<0.000000e+00> : vector<5xf32>
      %74 = vector.multi_reduction <add>, %73, %cst_41 [1] : vector<5x4xf32> to vector<5xf32>
      %75 = vector.shape_cast %74 : vector<5xf32> to vector<5x1xf32>
      %cst_42 = arith.constant dense<0.000000e+00> : vector<1xf32>
      %76 = vector.multi_reduction <add>, %75, %cst_42 [0] : vector<5x1xf32> to vector<1xf32>
      %77 = vector.shape_cast %76 : vector<1xf32> to vector<1x1xf32>
      %78 = vector.shape_cast %77 : vector<1x1xf32> to vector<1x1xf32>
      %79 = vector.broadcast %78 : vector<1x1xf32> to vector<1x128xf32>
      %c0_43 = arith.constant 0 : index
      %c0_44 = arith.constant 0 : index
      %c0_45 = arith.constant 0 : index
      %80 = vector.load %arg7[%c0_43, %c0_44, %c0_45] : memref<1x1x128xf32, #tpu.memory_space<vmem>>, vector<1x1x128xf32>
      %81 = vector.shape_cast %80 : vector<1x1x128xf32> to vector<1x128xf32>
      %82 = vector.shape_cast %79 : vector<1x128xf32> to vector<1x1x128xf32>
      tpu.vector_store %arg7[%c0_43, %c0_44, %c0_45], %82 {strides = array<i32>} : memref<1x1x128xf32, #tpu.memory_space<vmem>>, vector<1x1x128xf32>,
    } else {
    }
    return
  }
  func.func @transform_0(%arg0: i32, %arg1: i32) -> (i32, i32, i32) {
    %c0_i32 = arith.constant 0 : i32
    %c0_i32_0 = arith.constant 0 : i32
    return %arg0, %c0_i32, %arg1 : i32, i32, i32
  }
  func.func @transform_1(%arg0: i32, %arg1: i32) -> (i32, i32, i32) {
    %c0_i32 = arith.constant 0 : i32
    %c0_i32_0 = arith.constant 0 : i32
    return %arg0, %c0_i32, %arg1 : i32, i32, i32
  }
  func.func @transform_2(%arg0: i32, %arg1: i32) -> (i32, i32) {
    %c0_i32 = arith.constant 0 : i32
    %c0_i32_0 = arith.constant 0 : i32
    %c0_i32_1 = arith.constant 0 : i32
    return %c0_i32, %c0_i32_0 : i32, i32
  }
  func.func @transform_3(%arg0: i32, %arg1: i32) -> (i32, i32) {
    %c0_i32 = arith.constant 0 : i32
    %c0_i32_0 = arith.constant 0 : i32
    %c0_i32_1 = arith.constant 0 : i32
    return %c0_i32, %c0_i32_0 : i32, i32
  }
  func.func @transform_4(%arg0: i32, %arg1: i32) -> (i32, i32) {
    %c0_i32 = arith.constant 0 : i32
    %c0_i32_0 = arith.constant 0 : i32
    %c0_i32_1 = arith.constant 0 : i32
    return %c0_i32, %c0_i32_0 : i32, i32
  }
  func.func @transform_5(%arg0: i32, %arg1: i32) -> (i32, i32, i32) {
    %c0_i32 = arith.constant 0 : i32
    %c0_i32_0 = arith.constant 0 : i32
    %c0_i32_1 = arith.constant 0 : i32
    return %arg0, %c0_i32, %c0_i32_0 : i32, i32, i32
  }
}

</mosaic_0001>

<bundles_post_ra>
// kernel: tpu_custom_call.1
= control target key start
LH: loop header
LB: loop body
LE: loop exit
PB: predicated region body
PF: predicated region fallthrough
CT: control target
= control target key end

     0   :  { %10 = vsyncpa [#allocation6], 0  ;;  %s1050_s0 = inlined_call_operand.vmem [shape: f32[2,4,256], index: 0, kind: input, shape index: {}]   ;;  %s1051_s1 = inlined_call_operand.vmem [shape: f32[2,5,256], index: 1, kind: input, shape index: {}]   ;;  %s1052_s2 = inlined_call_operand.vmem [shape: f32[5,4], index: 2, kind: input, shape index: {}]   ;;  %s1053_s3 = inlined_call_operand.vmem [shape: f32[5,4], index: 3, kind: input, shape index: {}]   ;;  %s1054_s4 = inlined_call_operand.vmem [shape: f32[5,1], index: 4, kind: input, shape index: {}]   ;;  %s1055_s5 = inlined_call_operand.hbm [shape: f32[2,1,128], index: 5, kind: output, shape index: {}]  }
   0x1   :  { %12 = vsyncpa [#allocation6 + $0x1], 0  ;;  %s891_s18 = smov 0   ;;  %s893_s19 = smov 0  }
   0x2   :  { %s895_s20 = smov 0   ;;  %s897_s21 = smov 0  }
   0x3   :  { %s899_s22 = smov 0   ;;  %s901_s23 = smov 0  }
   0x4   :  { %s903_s24 = smov 0   ;;  %s905_s25 = smov 0  }
   0x5 LB: > { %s641_s26 = sadd.s32 4294967295, %s854_s25   ;;  %s642_s27 = sadd.s32 4294967294, %s854_s25   ;;  %s854_s25 = sphi %s905_s25, %s18_s25   ;;  %s850_s24 = sphi %s903_s24, %s1069_s24   ;;  %s846_s23 = sphi %s901_s23, %s1068_s23   ;;  %s842_s22 = sphi %s899_s22, %s1067_s22   ;;  %s838_s21 = sphi %s897_s21, %s1066_s21   ;;  %s834_s20 = sphi %s895_s20, %s1065_s20   ;;  %s830_s19 = sphi %s893_s19, %s1064_s19   ;;  %s826_s18 = sphi %s891_s18, %s1063_s18  }
   0x6   : > { %s27_s28 = sadd.s32 1, %s846_s23  ;;  %s30_s29 = sadd.s32 1, %s850_s24 }
   0x7   : > { %p28_p0 = scmp.ge.s32.totalorder %s27_s28, 2  ;;  %p166_p1 = scmp.ne.s32.totalorder %s834_s20, %s830_s19 }
   0x8   : > { %p167_p2 = scmp.eq.s32.totalorder %s641_s26, 3  ;;  %p172_p4 = scmp.ne.s32.totalorder %s830_s19, %s826_s18 }
   0x9   : > { %s1071_s28 = smov (%p28_p0, %s27_s28), 0  ;;  %s1073_s29 = smov (!%p28_p0, %s30_s29), %s850_s24 }
   0xa   : > { %1057 = sst [smem:[#allocation8_spill]] %s1071_s28  ;;  %p940_p3 = por %p167_p2, %p166_p1 }
   0xb   : > { %p32_p5 = scmp.ge.s32.totalorder %s1073_s29, 2  ;;  %p173_p6 = scmp.eq.s32.totalorder %s642_s27, 3 }
   0xc   : > { %p645_p7 = scmp.ge.s32.totalorder %s854_s25, 1  ;;  %p222_p8 = scmp.lt.s32.totalorder %s854_s25, 5 }
   0xd   : > { %s1075_s29 = smov (%p32_p5, %s1073_s29), 0  ;;  %p950_p9 = por %p173_p6, %p172_p4 }
   0xe   : > { %1059 = sst [smem:[#allocation9_spill]] %s1075_s29  ;;  %p223_p10 = pnand %p645_p7, %p222_p8 }
   0xf   : > { %s153_s7 = ssub.s32 %s850_s24, %s1075_s29  ;;  %s156_s8 = sadd.s32 1, %s834_s20 }
  0x10   : > { %p154_p11 = scmp.eq.s32.totalorder %s153_s7, 0  ;;  %226 = sbr.rel (%p223_p10) target bundleno = 536 (0x218), region = 40 }
  0x11   : > { %s258_s10 = sand.u32 (!%p223_p10), 1, %s830_s19   ;;  %p260_p12 = scmp.lt.s32.totalorder (!%p223_p10), %s842_s22, 1 }
  0x12   : > { %s958_s9 = scalar_select %p154_p11, %s834_s20, %s156_s8  }
  0x13   : > { %p262_p13 = scmp.lt.s32.totalorder (!%p223_p10), %s838_s21, 1  ;;  %s973_s28 = scalar_lea.vmem (!%p223_p10), [#allocation5], %s258_s10 }
  0x14   : > { %p650_p0 = scmp.ne.s32.totalorder (!%p223_p10), %s838_s21, 0 }
  0x17   : > { %s261_s11 = scalar_select %p260_p12, %s842_s22, 1 }
  0x18   : > { %s263_s12 = scalar_select %p262_p13, %s838_s21, 1 }
  0x19   : > { %s646_s13 = sshll.u32 %s261_s11, 1  ;;  %279 = sbr.rel (%p650_p0) target bundleno = 32 (0x20), region = 44  ;;  %vm280_vm0 = vcmask (!%p650_p0), 28672   ;;  %vm283_vm1 = vcmask (!%p650_p0), 4096   ;;  %v856_v0 = vmov (!%p650_p0), 0.0  }
  0x1a   : > { %s265_s14 = sadd.s32 %s646_s13, %s263_s12  ;;  %281 = vst.msk [vmem:[#allocation2] sm:$0x1f] (!%p650_p0), %vm280_vm0, %v856_v0  ;;  %282 = vst.msk [vmem:[#allocation3] sm:$0x1f] (!%p650_p0), %vm280_vm0, %v856_v0 }
  0x1b   : > { %s647_s15 = sshll.u32 %s265_s14, 2  ;;  %s649_s16 = sshll.u32 %s265_s14, 3  ;;  %284 = vst.msk [vmem:[#allocation4] sm:$0x1f] (!%p650_p0), %vm283_vm1, %v856_v0 }
  0x1c   : > { %s267_s27 = scalar_lea.vmem %s1050_s0, %s647_s15  ;;  %s275_s29 = scalar_lea.vmem %s1051_s1, %s649_s16 }
  0x20 PF: > { %v285_v1 = vld [vmem:[%s267_s27] sm:$0xf]  ;;  %vm287_vm2 = vcmask 1043456   ;;  %vm458_vm3 = vcmask 1044480   ;;  %v857_v2 = vmov 0.0   ;;  %vm858_vm4 = vmmov 0  }
  0x21   : > { %659 = vmatprep.subr.mxu0 %v857_v2  ;;  %v288_v3 = vsel %vm287_vm2, %v285_v1, -inf  ;;  %664 = vmatprep.subr.mxu1 %v857_v2  ;;  %v286_v4 = vld [vmem:[%s275_s29] sm:$0x1f]  ;;  %vm463_vm5 = vcmask 4096   ;;  %vm451_vm6 = vcmask 28672   ;;  %p651_p1 = scmp.ne.s32.totalorder %s838_s21, 1 }
  0x22   : > { %v289_v5 = vrot.slane %v288_v3, 4  ;;  %661 = vmatprep.mubr.msk.f32.mxu0 %vm858_vm4, %v857_v2  ;;  %666 = vmatprep.mubr.msk.f32.mxu1 %vm858_vm4, %v857_v2  ;;  %v459_v6 = vsel %vm458_vm3, %v286_v4, 0.0  ;;  %v377_v25 = vmul.f32 %v286_v4, %v286_v4  ;;  %v457_v26 = vld [vmem:[#allocation4] sm:$0x1f]  ;;  %v449_v29 = vld [vmem:[#allocation2] sm:$0x1f] }
  0x23   : > { %460 = vadd.xlane.f32.xlu0 %v459_v6  ;;  %v453_v34 = vld [vmem:[#allocation3] sm:$0x1f]  ;;  %v859_v39 = vmov (!%p651_p1), 0   ;;  %v520_v52 = vld [vmem:[%s1054_s4] sm:$0x1f] (!%p651_p1) }
  0x24   : > { %v290_v7 = vmax.f32 %v288_v3, %v289_v5  ;;  %748 = vset.pattern.permute.xlu0 (!%p651_p1), %v859_v39  ;;  %749 = vset.pattern.permute.xlu1 (!%p651_p1), %v859_v39  ;;  %v497_v55 = vld [vmem:[%s1053_s3] sm:$0x1f] (!%p651_p1) }
  0x25   : > { %v503_v57 = vmul.f32 (!%p651_p1), %v497_v55, %v497_v55  ;;  %v496_v0 = vld [vmem:[%s1052_s2] sm:$0x1f] (!%p651_p1) }
  0x26   : > { %v291_v8 = vrot.slane %v290_v7, 2 }
  0x28   : > { %v292_v9 = vmax.f32 %v290_v7, %v291_v8 }
  0x2a   : > { %v293_v10 = vrot.slane %v292_v9, 1 }
  0x2c   : > { %v294_v11 = vmax.f32 %v292_v9, %v293_v10 }
  0x2e   : > { %v295_v12 = vsub.f32 %v285_v1, %v294_v11 }
  0x30   : > { %v296_v13 = vmul.f32 1.442695, %v295_v12 }
  0x32   : > { %744 = vpow2.f32 %v296_v13 }
  0x3c   : > { %v745_v14 = vpop.eup %744 }
  0x3d   : > { %v298_v15 = vsel %vm287_vm2, %v745_v14, 0.0 }
  0x3e   : > { %v299_v16 = vrot.slane %v298_v15, 4 }
  0x40   : > { %v300_v17 = vadd.f32 %v299_v16, %v298_v15 }
  0x42   : > { %v301_v18 = vrot.slane %v300_v17, 2 }
  0x44   : > { %v302_v19 = vadd.f32 %v301_v18, %v300_v17 }
  0x46   : > { %v303_v20 = vrot.slane %v302_v19, 1 }
  0x48   : > { %v304_v21 = vadd.f32 %v303_v20, %v302_v19 }
  0x4a   : > { %746 = vrcp.f32 %v304_v21 }
  0x54   : > { %v747_v22 = vpop.eup %746 }
  0x55   : > { %v306_v23 = vmul.f32 %v747_v22, %v745_v14 }
  0x57   : > { %660 = vmatpush3.xpose.msra.mxu0 %v306_v23  ;;  %v378_v24 = vmul.f32 %v306_v23, %v306_v23 }
  0x59   : > { %665 = vmatpush3.xpose.msra.mxu1 %v378_v24 }
  0x5a   : > { %662 = vmatmul.mubr.f32.vlgmr.msra.gmra.mrb[0].mxu0 %v286_v4 }
  0x5c   : > { %667 = vmatmul.mubr.f32.vlgmr.msra.gmra.mrb[0].mxu1 %v377_v25 }
  0xb0   : > { %v461_v27 = vpop.xlane.xlu0 %460 }
  0xb1   : > { %v462_v28 = vadd.f32 %v461_v27, %v457_v26 }
  0xb3   : > { %464 = vst.msk [vmem:[#allocation4] sm:$0x1f] %vm463_vm5, %v462_v28 }
  0xba   : > { %v469_v38 = vld [vmem:[#allocation4] sm:$0x1f] (!%p651_p1) }
  0xbb   : > { %v478_v40 = vadd.f32 (!%p651_p1), 1e-06, %v469_v38  ;;  %v470_v41 = vsel (!%p651_p1), %vm463_vm5, %v469_v38, 0.0 }
  0xbc   : > { %v471_v42 = vrot.slane (!%p651_p1), %v470_v41, 4 }
  0xbd   : > { %v488_v43 = vmul.f32 (!%p651_p1), %v478_v40, %v478_v40 }
  0xbe   : > { %v472_v44 = vadd.f32 (!%p651_p1), %v471_v42, %v470_v41 }
  0xbf   : > { %491 = vperm.xlu0 (!%p651_p1), %748, %v488_v43  }
  0xc0   : > { %v473_v45 = vrot.slane (!%p651_p1), %v472_v44, 2 }
  0xc2   : > { %v474_v46 = vadd.f32 (!%p651_p1), %v473_v45, %v472_v44 }
  0xc3   : > { %482 = vperm.xlu0 (!%p651_p1), %748, %v478_v40  }
  0xc4   : > { %v475_v47 = vrot.slane (!%p651_p1), %v474_v46, 1 }
  0xc6   : > { %v476_v48 = vadd.f32 (!%p651_p1), %v475_v47, %v474_v46 }
  0xc8   : > { %v477_v49 = vadd.f32 (!%p651_p1), 10.0, %v476_v48 }
  0xca   : > { %750 = vrcp.f32 (!%p651_p1), %v477_v49 }
  0xd4   : > { %v751_v50 = vpop.eup (!%p651_p1), %750 }
  0xd5   : > { %v513_v51 = vmul.f32 (!%p651_p1), %v751_v50, %v478_v40 }
  0xd7   : > { %516 = vperm.xlu1 (!%p651_p1), %749, %v513_v51  }
  0xdb   : > { %523 = vperm.xlu1 (!%p651_p1), %749, %v520_v52  }
 0x12d   : > { %v373_v30 = vpop.f32.mrb[0].mxu0 }
 0x12e   : > { %v450_v31 = vadd.f32 %v449_v29, %v373_v30  ;;  %v663_v32 = vpop.f32.mrb[1].mxu0  ;;  %468 = sbr.rel (%p651_p1) target bundleno = 512 (0x200), region = 48 }
 0x12f   : > { %v445_v33 = vpop.f32.mrb[0].mxu1 }
 0x130   : > { %452 = vst.msk [vmem:[#allocation2] sm:$0x1f] %vm451_vm6, %v450_v31  ;;  %v454_v35 = vsub.f32 %v373_v30, %v445_v33  ;;  %v668_v36 = vpop.f32.mrb[1].mxu1 }
 0x132   : > { %v455_v37 = vadd.f32 %v454_v35, %v453_v34 }
 0x134   : > { %456 = vst.msk [vmem:[#allocation3] sm:$0x1f] %vm451_vm6, %v455_v37 }
 0x137   : > { %v479_v60 = vld [vmem:[#allocation2] sm:$0x1f] }
 0x13b   : > { %v487_v56 = vld [vmem:[#allocation3] sm:$0x1f] }
 0x13e   : > { %v492_v53 = vpop.permute.xlu0 %491 }
 0x13f   : > { %752 = vrcp.f32 %v492_v53 }
 0x142   : > { %v483_v54 = vpop.permute.xlu0 %482 }
 0x143   : > { %754 = vrcp.f32 %v483_v54 }
 0x149   : > { %v753_v58 = vpop.eup %752 }
 0x14a   : > { %v495_v59 = vmul.f32 %v753_v58, %v487_v56 }
 0x14c   : > { %v504_v61 = vadd.f32 %v503_v57, %v495_v59  ;;  %v508_v62 = vadd.f32 0.03, %v495_v59 }
 0x14d   : > { %v755_v63 = vpop.eup %754 }
 0x14e   : > { %v486_v1 = vmul.f32 %v755_v63, %v479_v60  ;;  %v505_v2 = vadd.f32 1e-06, %v504_v61  ;;  %756 = vlog2.f32 %v508_v62 }
 0x150   : > { %v498_v3 = vsub.f32 %v486_v1, %v496_v0  ;;  %758 = vrcp.f32 %v505_v2 }
 0x152   : > { %v499_v4 = vand.u32 2147483647, %v498_v3 }
 0x154   : > { %v500_v5 = vsub.f32 %v499_v4, %v497_v55 }
 0x156   : > { %v501_v6 = vmax.f32 %v500_v5, 0.0  ;;  %v517_v10 = vpop.permute.xlu1 %516 }
 0x158   : > { %v757_v7 = vpop.eup %756  ;;  %v502_v8 = vmul.f32 %v501_v6, %v501_v6 }
 0x159   : > { %v510_v12 = vmul.f32 0.6931472, %v757_v7 }
 0x15a   : > { %v759_v9 = vpop.eup %758  ;;  %v524_v15 = vpop.permute.xlu1 %523 }
 0x15b   : > { %v507_v11 = vmul.f32 %v759_v9, %v502_v8 }
 0x15d   : > { %v511_v13 = vadd.f32 %v510_v12, %v507_v11 }
 0x15f   : > { %v519_v14 = vmul.f32 %v517_v10, %v511_v13 }
 0x161   : > { %v526_v16 = vmul.f32 %v524_v15, %v519_v14 }
 0x163   : > { %v527_v17 = vsel %vm451_vm6, %v526_v16, 0.0 }
 0x164   : > { %528 = vadd.xlane.f32.xlu0 %v527_v17 }
 0x1f1   : > { %v529_v18 = vpop.xlane.xlu0 %528 }
 0x1f2   : > { %v530_v19 = vsel %vm458_vm3, %v529_v18, 0.0 }
 0x1f3   : > { %v531_v20 = vrot.slane %v530_v19, 4 }
 0x1f5   : > { %v532_v21 = vadd.f32 %v531_v20, %v530_v19 }
 0x1f7   : > { %v533_v22 = vrot.slane %v532_v21, 2 }
 0x1f9   : > { %v534_v23 = vadd.f32 %v533_v22, %v532_v21 }
 0x1fb   : > { %v535_v24 = vrot.slane %v534_v23, 1 }
 0x1fd   : > { %v536_v25 = vadd.f32 %v535_v24, %v534_v23 }
 0x1ff   : > { %537 = vst [vmem:[%s973_s28] sm:$0x1] %v536_v25 }
 0x200 PF: > { %s652_s15 = sshll.u32 %s842_s22, 4  ;;  %s551_s27 = sshll.u32 %s973_s28, 4  ;;  %s552_s27 = int_to_ptr.vmem [resolvable:$true] %s551_s27 }
 0x201   : > { %s1000_s26 = scalar_lea.hbm %s1055_s5, %s652_s15  ;;  %s539_s7 = scalar_lea.sflag [#allocation6], %s258_s10 }
 0x202   : > { %s760_s8 = scalar_lea.vmem %s552_s27, 16  ;;  %s860_s21 = smov [#allocation5]  }
 0x203   : > { %p761_p2 = scmp.ne.s32.totalorder %s552_s27, %s760_s8  ;;  %s764_s29 = sshll.u32 %s860_s21, 4  ;;  %s765_s29 = int_to_ptr.vmem [resolvable:$false] %s764_s29 }
 0x204   : > { %s766_s11 = scalar_lea.vmem %s765_s29, 32  ;;  %p767_p6 = scmp.lt.s32.totalorder %s552_s27, %s765_s29 }
 0x205   : > { %p762_p4 = pnand %p761_p2, %p940_p3  ;;  %p768_p7 = scmp.lt.s32.totalorder %s766_s11, %s760_s8 }
 0x207   : > { %p763_p5 = pneg %p762_p4  ;;  %p769_p8 = por %p768_p7, %p767_p6 }
 0x209   : > { %p770_p10 = pnand %p769_p8, %p763_p5 }
 0x20b   : > { %773 = shalt.err (!%p770_p10)
}
 0x20c   : > { %s774_s22 = scalar_lea.hbm %s1000_s26, 16  ;;  %s778_s12 = scalar_lea.hbm %s1055_s5, 32 }
 0x20d   : > { %p775_p11 = scmp.ne.s32.totalorder %s1000_s26, %s774_s22  ;;  %p779_p0 = scmp.lt.u32.totalorder %s1000_s26, %s1055_s5 }
 0x20e   : > { %p780_p1 = scmp.lt.u32.totalorder %s778_s12, %s774_s22  ;;  %p782_p4 = scmp.lt.u32.totalorder %s774_s22, %s1000_s26 }
 0x20f   : > { %p776_p12 = pnand %p775_p11, %p940_p3 }
 0x210   : > { %p781_p2 = por %p780_p1, %p779_p0 }
 0x211   : > { %p777_p13 = pneg %p776_p12 }
 0x212   : > { %p783_p5 = por %p782_p4, %p781_p2 }
 0x214   : > { %p784_p6 = pnand %p783_p5, %p777_p13 }
 0x216   : > { %787 = shalt.err (!%p784_p6)
}
 0x217   : > { %669 = dma.vmem_to_hbm [thread:$0]  (%p940_p3), %s552_s27, 16, %s1000_s26, %s539_s7  }
 0x218 PF: > { %p675_p7 = scmp.ge.s32.totalorder %s854_s25, 2  ;;  %s563_s15 = sand.u32 1, %s826_s18  }
 0x219   : > { %s564_s16 = scalar_lea.sflag [#allocation6], %s563_s15 }
 0x21a   : > { %p672_p8 = pnand %p675_p7, %p950_p9 }
 0x21c   : > { %821 = dma.done.wait (!%p672_p8), %s564_s16, 16  }
 0x21d   : > { %823 = vsyncadd (!%p672_p8), %s564_s16, 4294967280  ;;  %s18_s25 = sadd.s32 1, %s854_s25   ;;  %s1061_s30 = sld [smem:[#allocation8_spill]] }
 0x21e   : > { %p15_p10 = scmp.ge.s32.totalorder %s18_s25, 6   ;;  %s1062_s17 = sld [smem:[#allocation9_spill]] }
 0x21f   : > { %s1063_s18 = smov %s830_s19  ;;  %s1064_s19 = smov %s834_s20 }
 0x220   : > { %s1065_s20 = smov %s958_s9  ;;  %s1066_s21 = smov %s846_s23 }
 0x221   : > { %s1067_s22 = smov %s850_s24  ;;  %17 = sbr.rel (!%p15_p10) target bundleno = 5 (0x5), region = 86 }
 0x223   : > { %s1068_s23 = smov %s1061_s30 }
 0x224   : > { %s1069_s24 = smov %s1062_s17 }
 0x228   :  { %568 = vsyncpa [#allocation6], 1 }
 0x229   :  { %570 = vsyncpa [#allocation6 + $0x1], 1 }

</bundles_post_ra>
